<compile_context>
chip_gen: v7x
topology: tpu7x:2x2x1
jax: 0.10.0
libtpu: 0.0.40
codegen_flags: <defaults>
</compile_context>

<pallas_src>
import math
import jax
import jax.numpy as jnp
from jax.experimental import pallas as pl
from jax.experimental.pallas import tpu as pltpu

LANE = 128


def _round_up(x, m):
    return ((x + m - 1) // m) * m


def mlp_actor_kernel(x_ref, w1_ref, b1_ref, w2_ref, b2_ref, w3_ref, b3_ref, o_ref):
    # One batch tile per grid step.  Matmuls on the MXU (bf16 operands, f32 accumulate),
    # relu on the VPU, tanh on the EUP.  x arrives already in the compute dtype.
    cdt = w1_ref.dtype

    x = x_ref[...]
    h1 = jnp.dot(x, w1_ref[...], preferred_element_type=jnp.float32) + b1_ref[...]
    h1 = jnp.maximum(h1, 0.0)

    h2 = jnp.dot(h1.astype(cdt), w2_ref[...], preferred_element_type=jnp.float32) + b2_ref[...]
    h2 = jnp.maximum(h2, 0.0)

    # Narrow final projection: (tb, hid_p) @ (hid_p, out_dim) -> (tb, out_dim).
    h3 = jnp.dot(h2.astype(cdt), w3_ref[...], preferred_element_type=jnp.float32) + b3_ref[...]
    o_ref[...] = jnp.tanh(h3).astype(o_ref.dtype)


def prepare_mlp_actor_params(params, compute_dtype=jnp.bfloat16):
    """Pad/cast weights ONCE (hidden dim -> 128 lanes; output dim left unpadded)."""
    in_dim, hidden = params["w1"].shape
    out_dim = params["w3"].shape[1]
    hid_p = _round_up(hidden, LANE)  # 64 -> 128

    def pad2(a, rows, cols, dt):
        return jnp.zeros((rows, cols), dt).at[: a.shape[0], : a.shape[1]].set(a.astype(dt))

    return dict(
        w1=pad2(params["w1"], in_dim, hid_p, compute_dtype),
        b1=pad2(params["b1"], 1, hid_p, jnp.float32),
        w2=pad2(params["w2"], hid_p, hid_p, compute_dtype),
        b2=pad2(params["b2"], 1, hid_p, jnp.float32),
        w3=pad2(params["w3"], hid_p, out_dim, compute_dtype),  # lane-narrow output proj
        b3=params["b3"].astype(jnp.float32),                   # (1, out_dim)
    )


def mlp_actor_forward(x, pp, *, block_b=1024):
    """x: [B, input_dim]. pp: prepared (padded) params from prepare_mlp_actor_params."""
    B, _ = x.shape
    in_dim = pp["w1"].shape[0]
    out_dim = pp["w3"].shape[1]
    cdt = pp["w1"].dtype

    # Batch tile: multiple of 8 sublanes.  For batches >= 16 rows, cap the tile at
    # ~half the batch so there are >= 2 grid steps and the "parallel" axis can be
    # sharded across both TensorCores on v7x.  block_b=1024 keeps per-step VMEM small
    # (x tile + out tile + two (tb,128) f32 temporaries) on every generation.
    tb = min(block_b, _round_up(B, 8))
    if B >= 16:
        tb = min(tb, _round_up(-(-B // 2), 8))
    Bp = _round_up(B, tb)

    # Cast x to the compute dtype up front (halves input DMA bytes); only zero-pad the
    # batch when B is not already a multiple of the tile.
    xp = x.astype(cdt)
    if Bp != B:
        xp = jnp.zeros((Bp, in_dim), cdt).at[:B].set(xp)

    w1, b1, w2, b2, w3, b3 = (pp[k] for k in ("w1", "b1", "w2", "b2", "w3", "b3"))

    def resident(a):  # constant index map -> stays VMEM-resident across the grid
        return pl.BlockSpec(a.shape, lambda i: (0,) * a.ndim)

    itemsize = lambda a: a.size * a.dtype.itemsize
    cost = pl.CostEstimate(
        flops=2 * Bp * (in_dim * w1.shape[1] + w2.shape[0] * w2.shape[1] + w3.shape[0] * out_dim),
        transcendentals=Bp * out_dim,
        bytes_accessed=itemsize(xp)
        + sum(itemsize(a) for a in (w1, b1, w2, b2, w3, b3))
        + Bp * out_dim * 4,
    )

    # TODO(synk): pipeline_mode=pl.Buffered(1) on the resident weight specs would save a
    # little VMEM (they never change block index); left at the default for robustness.
    out = pl.pallas_call(
        mlp_actor_kernel,
        out_shape=jax.ShapeDtypeStruct((Bp, out_dim), jnp.float32),
        grid=(Bp // tb,),
        in_specs=[
            pl.BlockSpec((tb, in_dim), lambda i: (i, 0)),
            resident(w1), resident(b1),
            resident(w2), resident(b2),
            resident(w3), resident(b3),
        ],
        out_specs=pl.BlockSpec((tb, out_dim), lambda i: (i, 0)),
        compiler_params=pltpu.CompilerParams(dimension_semantics=("parallel",)),
        cost_estimate=cost,
    )(xp, w1, b1, w2, b2, w3, b3)

    return out[:B] if Bp != B else out


def init_mlp_actor_params(key, input_dim, output_dim, hidden_size=64):
    """Deterministic init mirroring nn.Linear's default U(-1/sqrt(fan_in), 1/sqrt(fan_in))."""
    ks = jax.random.split(key, 6)

    def linear(kw, kb, fan_in, fan_out):
        bound = 1.0 / math.sqrt(fan_in)
        w = jax.random.uniform(kw, (fan_in, fan_out), jnp.float32, -bound, bound)
        b = jax.random.uniform(kb, (1, fan_out), jnp.float32, -bound, bound)
        return w, b

    w1, b1 = linear(ks[0], ks[1], input_dim, hidden_size)
    w2, b2 = linear(ks[2], ks[3], hidden_size, hidden_size)
    w3, b3 = linear(ks[4], ks[5], hidden_size, output_dim)
    return dict(w1=w1, b1=b1, w2=w2, b2=b2, w3=w3, b3=b3)


def mlp_actor_reference(x, p):
    h1 = jnp.maximum(x @ p["w1"] + p["b1"], 0.0)
    h2 = jnp.maximum(h1 @ p["w2"] + p["b2"], 0.0)
    return jnp.tanh(h2 @ p["w3"] + p["b3"])


if __name__ == "__main__":
    key = jax.random.PRNGKey(0)
    k_x, k_p = jax.random.split(key)

    batch, input_dim, output_dim, hidden = 8, 16, 4, 64
    x = jax.random.normal(k_x, (batch, input_dim), jnp.float32)
    params = init_mlp_actor_params(k_p, input_dim, output_dim, hidden)

    # bf16 MXU operands on every generation (relu / bias / tanh stay on the f32
    # accumulator, so numerics match the previous v6e/v7x path).
    prepared = prepare_mlp_actor_params(params, compute_dtype=jnp.bfloat16)

    out = mlp_actor_forward(x, prepared)
    out = jax.block_until_ready(out)

    ref = mlp_actor_reference(x, params)
    assert out.shape == (batch, output_dim)
    assert jnp.allclose(out, ref, atol=3e-2, rtol=3e-2), "mismatch vs JAX reference (bf16 operands)"

    print("KERNEL_OK")
</pallas_src>

<mosaic_0001>
module attributes {stable_mosaic.version = 11 : i64} {
  func.func @mlp_actor_kernel(%arg0: i32, %arg1: memref<8x16xbf16, #tpu.memory_space<vmem>>, %arg2: memref<16x128xbf16, #tpu.memory_space<vmem>>, %arg3: memref<1x128xf32, #tpu.memory_space<vmem>>, %arg4: memref<128x128xbf16, #tpu.memory_space<vmem>>, %arg5: memref<1x128xf32, #tpu.memory_space<vmem>>, %arg6: memref<128x4xbf16, #tpu.memory_space<vmem>>, %arg7: memref<1x4xf32, #tpu.memory_space<vmem>>, %arg8: memref<8x4xf32, #tpu.memory_space<vmem>>) attributes {dimension_semantics = [#tpu.dimension_semantics<parallel>], iteration_bounds = array<i64: 1>, scalar_prefetch = 0 : i64, scratch_operands = 0 : i64, tpu.core_type = #tpu.core_type<tc>, window_params = [{transform_indices = @transform_0, window_bounds = array<i64: 8, 16>}, {pipeline_mode = #tpu.pipeline_mode<synchronous>, transform_indices = @transform_1, window_bounds = array<i64: 16, 128>}, {pipeline_mode = #tpu.pipeline_mode<synchronous>, transform_indices = @transform_2, window_bounds = array<i64: 1, 128>}, {pipeline_mode = #tpu.pipeline_mode<synchronous>, transform_indices = @transform_3, window_bounds = array<i64: 128, 128>}, {pipeline_mode = #tpu.pipeline_mode<synchronous>, transform_indices = @transform_4, window_bounds = array<i64: 1, 128>}, {pipeline_mode = #tpu.pipeline_mode<synchronous>, transform_indices = @transform_5, window_bounds = array<i64: 128, 4>}, {pipeline_mode = #tpu.pipeline_mode<synchronous>, transform_indices = @transform_6, window_bounds = array<i64: 1, 4>}, {transform_indices = @transform_7, window_bounds = array<i64: 8, 4>}]} {
    %c0 = arith.constant 0 : index
    %c0_0 = arith.constant 0 : index
    %0 = vector.load %arg1[%c0, %c0_0] : memref<8x16xbf16, #tpu.memory_space<vmem>>, vector<8x16xbf16>
    %c0_1 = arith.constant 0 : index
    %c0_2 = arith.constant 0 : index
    %1 = vector.load %arg2[%c0_1, %c0_2] : memref<16x128xbf16, #tpu.memory_space<vmem>>, vector<16x128xbf16>
    %cst = arith.constant dense<0.000000e+00> : vector<8x128xf32>
    %2 = tpu.matmul %0, %1, %cst {dimension_numbers = #tpu.dot_dimension_numbers<[1], [0], [0], [1], [0, 0, 1, 1], [], []>} : vector<8x16xbf16>, vector<16x128xbf16>, vector<8x128xf32> -> vector<8x128xf32>
    %c0_3 = arith.constant 0 : index
    %c0_4 = arith.constant 0 : index
    %3 = vector.load %arg3[%c0_3, %c0_4] : memref<1x128xf32, #tpu.memory_space<vmem>>, vector<1x128xf32>
    %4 = vector.broadcast %3 : vector<1x128xf32> to vector<8x128xf32>
    %5 = arith.addf %2, %4 : vector<8x128xf32>
    %cst_5 = arith.constant 0.000000e+00 : f32
    %6 = vector.broadcast %cst_5 : f32 to vector<8x128xf32>
    %7 = arith.maximumf %5, %6 : vector<8x128xf32>
    %8 = arith.truncf %7 : vector<8x128xf32> to vector<8x128xbf16>
    %c0_6 = arith.constant 0 : index
    %c0_7 = arith.constant 0 : index
    %9 = vector.load %arg4[%c0_6, %c0_7] : memref<128x128xbf16, #tpu.memory_space<vmem>>, vector<128x128xbf16>
    %cst_8 = arith.constant dense<0.000000e+00> : vector<8x128xf32>
    %10 = tpu.matmul %8, %9, %cst_8 {dimension_numbers = #tpu.dot_dimension_numbers<[1], [0], [0], [1], [0, 0, 1, 1], [], []>} : vector<8x128xbf16>, vector<128x128xbf16>, vector<8x128xf32> -> vector<8x128xf32>
    %c0_9 = arith.constant 0 : index
    %c0_10 = arith.constant 0 : index
    %11 = vector.load %arg5[%c0_9, %c0_10] : memref<1x128xf32, #tpu.memory_space<vmem>>, vector<1x128xf32>
    %12 = vector.broadcast %11 : vector<1x128xf32> to vector<8x128xf32>
    %13 = arith.addf %10, %12 : vector<8x128xf32>
    %cst_11 = arith.constant 0.000000e+00 : f32
    %14 = vector.broadcast %cst_11 : f32 to vector<8x128xf32>
    %15 = arith.maximumf %13, %14 : vector<8x128xf32>
    %16 = arith.truncf %15 : vector<8x128xf32> to vector<8x128xbf16>
    %c0_12 = arith.constant 0 : index
    %c0_13 = arith.constant 0 : index
    %17 = vector.load %arg6[%c0_12, %c0_13] : memref<128x4xbf16, #tpu.memory_space<vmem>>, vector<128x4xbf16>
    %cst_14 = arith.constant dense<0.000000e+00> : vector<8x4xf32>
    %18 = tpu.matmul %16, %17, %cst_14 {dimension_numbers = #tpu.dot_dimension_numbers<[1], [0], [0], [1], [0, 0, 1, 1], [], []>} : vector<8x128xbf16>, vector<128x4xbf16>, vector<8x4xf32> -> vector<8x4xf32>
    %c0_15 = arith.constant 0 : index
    %c0_16 = arith.constant 0 : index
    %19 = vector.load %arg7[%c0_15, %c0_16] : memref<1x4xf32, #tpu.memory_space<vmem>>, vector<1x4xf32>
    %20 = vector.broadcast %19 : vector<1x4xf32> to vector<8x4xf32>
    %21 = arith.addf %18, %20 : vector<8x4xf32>
    %22 = math.tanh %21 : vector<8x4xf32>
    %c0_17 = arith.constant 0 : index
    %c0_18 = arith.constant 0 : index
    %23 = vector.load %arg8[%c0_17, %c0_18] : memref<8x4xf32, #tpu.memory_space<vmem>>, vector<8x4xf32>
    tpu.vector_store %arg8[%c0_17, %c0_18], %22 {strides = array<i32>} : memref<8x4xf32, #tpu.memory_space<vmem>>, vector<8x4xf32>,
    return
  }
  func.func @transform_0(%arg0: i32) -> (i32, i32) {
    %c0_i32 = arith.constant 0 : i32
    %c0_i32_0 = arith.constant 0 : i32
    return %arg0, %c0_i32 : i32, i32
  }
  func.func @transform_1(%arg0: i32) -> (i32, i32) {
    %c0_i32 = arith.constant 0 : i32
    %c0_i32_0 = arith.constant 0 : i32
    %c0_i32_1 = arith.constant 0 : i32
    return %c0_i32, %c0_i32_0 : i32, i32
  }
  func.func @transform_2(%arg0: i32) -> (i32, i32) {
    %c0_i32 = arith.constant 0 : i32
    %c0_i32_0 = arith.constant 0 : i32
    %c0_i32_1 = arith.constant 0 : i32
    return %c0_i32, %c0_i32_0 : i32, i32
  }
  func.func @transform_3(%arg0: i32) -> (i32, i32) {
    %c0_i32 = arith.constant 0 : i32
    %c0_i32_0 = arith.constant 0 : i32
    %c0_i32_1 = arith.constant 0 : i32
    return %c0_i32, %c0_i32_0 : i32, i32
  }
  func.func @transform_4(%arg0: i32) -> (i32, i32) {
    %c0_i32 = arith.constant 0 : i32
    %c0_i32_0 = arith.constant 0 : i32
    %c0_i32_1 = arith.constant 0 : i32
    return %c0_i32, %c0_i32_0 : i32, i32
  }
  func.func @transform_5(%arg0: i32) -> (i32, i32) {
    %c0_i32 = arith.constant 0 : i32
    %c0_i32_0 = arith.constant 0 : i32
    %c0_i32_1 = arith.constant 0 : i32
    return %c0_i32, %c0_i32_0 : i32, i32
  }
  func.func @transform_6(%arg0: i32) -> (i32, i32) {
    %c0_i32 = arith.constant 0 : i32
    %c0_i32_0 = arith.constant 0 : i32
    %c0_i32_1 = arith.constant 0 : i32
    return %c0_i32, %c0_i32_0 : i32, i32
  }
  func.func @transform_7(%arg0: i32) -> (i32, i32) {
    %c0_i32 = arith.constant 0 : i32
    %c0_i32_0 = arith.constant 0 : i32
    return %arg0, %c0_i32 : i32, i32
  }
}

</mosaic_0001>

<bundles_post_ra>
// kernel: tpu_custom_call.1
= control target key start
LH: loop header
LB: loop body
LE: loop exit
PB: predicated region body
PF: predicated region fallthrough
CT: control target
= control target key end

     0   :  { %v428_v0 = vmov 0.0   ;;  %vm429_vm0 = vmmov 0   ;;  %vm43_vm1 = vcmask 130048   ;;  %vm314_vm2 = vcmask 31744   ;;  %s556_s1 = inlined_call_operand.vmem [shape: bf16[16,128], index: 1, kind: input, shape index: {}]   ;;  %s557_s0 = inlined_call_operand.vmem [shape: bf16[8,16], index: 0, kind: input, shape index: {}]   ;;  %s558_s3 = inlined_call_operand.vmem [shape: bf16[128,128], index: 3, kind: input, shape index: {}]   ;;  %s559_s5 = inlined_call_operand.vmem [shape: bf16[128,4], index: 5, kind: input, shape index: {}]   ;;  %s560_s2 = inlined_call_operand.vmem [shape: f32[1,128], index: 2, kind: input, shape index: {}]   ;;  %s561_s4 = inlined_call_operand.vmem [shape: f32[1,128], index: 4, kind: input, shape index: {}]   ;;  %s562_s6 = inlined_call_operand.vmem [shape: f32[1,4], index: 6, kind: input, shape index: {}]   ;;  %s563_s7 = inlined_call_operand.vmem [shape: f32[8,4], index: 7, kind: output, shape index: {}]  }
   0x1   :  { %361 = vmatprep.subr.bf16.mxu0 %v428_v0  ;;  %v409_v1 = vld [vmem:[%s556_s1] sm:$0xff]   ;;  %363 = vmatprep.mubr.msk.bf16.mxu0 %vm429_vm0, %v428_v0  ;;  %v411_v4 = vld [vmem:[%s558_s3 + $0x8] sm:$0xff]   ;;  %v412_v5 = vld [vmem:[%s558_s3 + $0x10] sm:$0xff]  }
   0x2   :  { %v27_v2 = vld [vmem:[%s557_s0] sm:$0xf]  ;;  %367 = vmatprep.subr.bf16.mxu1 %v428_v0  ;;  %383 = vmatprep.mubr.msk.bf16.mxu1 %vm429_vm0, %v428_v0  ;;  %v413_v6 = vld [vmem:[%s558_s3 + $0x18] sm:$0xff]   ;;  %v415_v8 = vld [vmem:[%s558_s3 + $0x28] sm:$0xff]  }
   0x3   :  { %362 = vmatpush3.bf16.msra.mxu0 %v409_v1  ;;  %v410_v3 = vld [vmem:[%s558_s3] sm:$0xff]   ;;  %v416_v9 = vld [vmem:[%s558_s3 + $0x30] sm:$0xff]   ;;  %v417_v10 = vld [vmem:[%s558_s3 + $0x38] sm:$0xff]  }
   0x4   :  { %387 = vmatprep.subr.bf16.mxu0 %v428_v0  ;;  %368 = vmatpush3.bf16.msra.mxu1 %v410_v3  ;;  %v414_v7 = vld [vmem:[%s558_s3 + $0x20] sm:$0xff]   ;;  %v419_v12 = vld [vmem:[%s559_s5 + $0x8] sm:$0xff]   ;;  %v420_v13 = vld [vmem:[%s559_s5 + $0x10] sm:$0xff]  }
   0x5   :  { %369 = vmatprep.subr.bf16.mxu1 %v428_v0  ;;  %v418_v11 = vld [vmem:[%s559_s5] sm:$0xff]   ;;  %v421_v14 = vld [vmem:[%s559_s5 + $0x18] sm:$0xff]   ;;  %v423_v16 = vld [vmem:[%s559_s5 + $0x28] sm:$0xff]  }
   0x6   :  { %364 = vmatmul.mubr.msk.bf16.vlgmr.msra.gmra.mrb[0].mxu0 %vm43_vm1, %v27_v2  ;;  %v422_v15 = vld [vmem:[%s559_s5 + $0x20] sm:$0xff]   ;;  %v424_v25 = vld [vmem:[%s559_s5 + $0x30] sm:$0xff]   ;;  %v425_v26 = vld [vmem:[%s559_s5 + $0x38] sm:$0xff]  }
   0x7   :  { %403 = vmatprep.mubr.msk.bf16.mxu0 %vm429_vm0, %v428_v0  ;;  %388 = vmatpush3.bf16.msra.mxu0 %v418_v11  ;;  %v320_v17 = vld [vmem:[%s560_s2] ss:$0 sm:$0xff] }
   0x8   :  { %370 = vmatpush3.bf16.msra.mxu1 %v411_v4  ;;  %389 = vmatprep.subr.bf16.mxu0 %v428_v0  ;;  %v323_v27 = vld [vmem:[%s561_s4] ss:$0 sm:$0xff] }
   0x9   :  { %371 = vmatprep.subr.bf16.mxu1 %v428_v0  ;;  %v332_v35 = vld [vmem:[%s562_s6] ss:$0 sm:$0xff] }
   0xb   :  { %390 = vmatpush3.bf16.msra.mxu0 %v419_v12 }
   0xc   :  { %372 = vmatpush3.bf16.msra.mxu1 %v412_v5  ;;  %391 = vmatprep.subr.bf16.mxu0 %v428_v0 }
   0xd   :  { %373 = vmatprep.subr.bf16.mxu1 %v428_v0 }
   0xf   :  { %392 = vmatpush3.bf16.msra.mxu0 %v420_v13 }
  0x10   :  { %374 = vmatpush3.bf16.msra.mxu1 %v413_v6  ;;  %393 = vmatprep.subr.bf16.mxu0 %v428_v0 }
  0x11   :  { %375 = vmatprep.subr.bf16.mxu1 %v428_v0 }
  0x13   :  { %394 = vmatpush3.bf16.msra.mxu0 %v421_v14 }
  0x14   :  { %376 = vmatpush3.bf16.msra.mxu1 %v414_v7  ;;  %395 = vmatprep.subr.bf16.mxu0 %v428_v0 }
  0x15   :  { %377 = vmatprep.subr.bf16.mxu1 %v428_v0 }
  0x17   :  { %396 = vmatpush3.bf16.msra.mxu0 %v422_v15 }
  0x18   :  { %378 = vmatpush3.bf16.msra.mxu1 %v415_v8  ;;  %397 = vmatprep.subr.bf16.mxu0 %v428_v0 }
  0x19   :  { %379 = vmatprep.subr.bf16.mxu1 %v428_v0 }
  0x1b   :  { %398 = vmatpush3.bf16.msra.mxu0 %v423_v16 }
  0x1c   :  { %380 = vmatpush3.bf16.msra.mxu1 %v416_v9  ;;  %399 = vmatprep.subr.bf16.mxu0 %v428_v0 }
  0x1d   :  { %381 = vmatprep.subr.bf16.mxu1 %v428_v0 }
  0x1f   :  { %400 = vmatpush3.bf16.msra.mxu0 %v424_v25 }
  0x20   :  { %382 = vmatpush3.bf16.msra.mxu1 %v417_v10  ;;  %401 = vmatprep.subr.bf16.mxu0 %v428_v0 }
  0x23   :  { %402 = vmatpush3.bf16.msra.mxu0 %v425_v26 }
  0xd9   :  { %v81_v18 = vpop.f32.mrb[0].mxu0 }
  0xda   :  { %v82_v19 = vadd.f32 %v320_v17, %v81_v18  ;;  %v365_v20 = vpop.f32.mrb[1].mxu0 }
  0xdb   :  { %v84_v21 = vpop.f32.mrb[2].mxu0 }
  0xdc   :  { %v87_v22 = vmax.f32 %v82_v19, 0.0  ;;  %v366_v23 = vpop.f32.mrb[3].mxu0 }
  0xde   :  { %v88_v24 = vpack.c.bf16 %v87_v22, %v87_v22 }
  0xe0   :  { %384 = vmatmul.mubr.bf16.vlgmr.msra.gmra.mrb[0].mxu1 %v88_v24 }
 0x1b3   :  { %v194_v28 = vpop.f32.mrb[0].mxu1 }
 0x1b4   :  { %v195_v29 = vadd.f32 %v323_v27, %v194_v28  ;;  %v385_v30 = vpop.f32.mrb[1].mxu1 }
 0x1b5   :  { %v197_v31 = vpop.f32.mrb[2].mxu1 }
 0x1b6   :  { %v200_v32 = vmax.f32 %v195_v29, 0.0  ;;  %v386_v33 = vpop.f32.mrb[3].mxu1 }
 0x1b8   :  { %v201_v34 = vpack.c.bf16 %v200_v32, %v200_v32 }
 0x1ba   :  { %404 = vmatmul.mubr.bf16.vlgmr.msra.gmra.mrb[4].mxu0 %v201_v34 }
 0x28d   :  { %v307_v36 = vpop.f32.mrb[4].mxu0 }
 0x28e   :  { %v308_v37 = vadd.f32 %v332_v35, %v307_v36  ;;  %v405_v38 = vpop.f32.mrb[5].mxu0 }
 0x28f   :  { %v310_v39 = vpop.f32.mrb[6].mxu0 }
 0x290   :  { %426 = vtanh.f32 %v308_v37  ;;  %v406_v40 = vpop.f32.mrb[7].mxu0 }
 0x29a   :  { %v427_v41 = vpop.eup %426 }
 0x29b   :  { %315 = vst.msk [vmem:[%s563_s7] sm:$0xff] %vm314_vm2, %v427_v41 }

</bundles_post_ra>
